<compile_context>
chip_gen: v5e
topology: v5e:2x2
jax: 0.10.0
libtpu: 0.0.40
codegen_flags: <defaults>
</compile_context>

<pallas_src>
import functools

import jax
import jax.numpy as jnp
from jax.experimental import pallas as pl
from jax.experimental.pallas import tpu as pltpu


def _round_up(x, m):
    return ((x + m - 1) // m) * m


def _device_params():
    """Generation-aware launch parameters (core split / TM cap / VMEM budget)."""
    try:
        kind = jax.devices()[0].device_kind.lower()
    except Exception:
        kind = ""
    is_v7 = "7" in kind            # v7x: 2 TensorCores, 64 MiB VMEM per core
    ncores = 2 if is_v7 else 1     # v5e/v6e: single TensorCore -> no outer split
    tm_max = 256 if is_v7 else 512
    vmem_limit = (40 if is_v7 else 64) * 1024 * 1024
    return ncores, tm_max, vmem_limit


def _hann_window(win_length):
    # torch.hann_window default is periodic=True
    n = jnp.arange(win_length, dtype=jnp.float32)
    return 0.5 - 0.5 * jnp.cos(2.0 * jnp.pi * n / win_length)


def _frame_signal(x, n_fft, hop_length):
    # torch.stft center=True, pad_mode='reflect'
    pad = n_fft // 2
    xp = jnp.pad(x, ((0, 0), (pad, pad)), mode="reflect")
    n_frames = 1 + (xp.shape[1] - n_fft) // hop_length
    starts = jnp.arange(n_frames) * hop_length
    idx = starts[:, None] + jnp.arange(n_fft)[None, :]
    return xp[:, idx]  # (B, n_frames, n_fft)


@functools.partial(jax.jit, static_argnames=("n_fft", "hop_length", "win_length"))
def single_stft_loss(prediction, target, *, n_fft, hop_length, win_length):
    ncores, tm_max, vmem_limit = _device_params()

    B = prediction.shape[0]
    F = n_fft // 2 + 1
    FP = _round_up(F, 128)                       # lane-dense frequency width

    # --- glue: framing, directly in bf16 (half the frames HBM stream) ---
    # TODO(synk): for very small hop/n_fft ratios the framed copy still inflates HBM
    # traffic by n_fft/hop; assembling frames in-kernel from a pl.ANY signal ref with
    # manual DMA would remove that.
    p_frames = _frame_signal(prediction.astype(jnp.bfloat16), n_fft, hop_length)
    t_frames = _frame_signal(target.astype(jnp.bfloat16), n_fft, hop_length)
    n_frames = p_frames.shape[1]
    M = B * n_frames
    frames = jnp.stack(
        [p_frames.reshape(M, n_fft), t_frames.reshape(M, n_fft)], axis=0
    )  # (2, M, n_fft) bf16: prediction rows stacked over target rows

    # --- glue: fused, window-folded, lane-padded real-DFT basis (n_fft, 2*FP), bf16 ---
    win = _hann_window(win_length)
    left = (n_fft - win_length) // 2
    win_full = jnp.pad(win, (left, n_fft - win_length - left))       # (n_fft,)
    k = jnp.arange(n_fft, dtype=jnp.float32)[:, None]
    f = jnp.arange(F, dtype=jnp.float32)[None, :]
    ang = 2.0 * jnp.pi * k * f / n_fft
    basis = jnp.zeros((n_fft, 2 * FP), jnp.float32)
    basis = basis.at[:, :F].set(jnp.cos(ang) * win_full[:, None])          # real part
    basis = basis.at[:, FP:FP + F].set(-jnp.sin(ang) * win_full[:, None])  # imag part
    basis = basis.astype(jnp.bfloat16)

    # --- row tiling: TM multiple of 16 (bf16 sublane packing), sized per generation ---
    TM = max(16, min(tm_max, _round_up(-(-M // ncores), 16)))
    tiles_per_core = -(-M // (ncores * TM))
    Mp = ncores * tiles_per_core * TM
    if Mp != M:
        frames = jnp.pad(frames, ((0, 0), (0, Mp - M), (0, 0)))  # zero rows contribute 0

    def kernel(fr_ref, basis_ref, accd_ref, acct_ref, accl_ref):
        i = pl.program_id(1)

        @pl.when(i == 0)
        def _():
            accd_ref[...] = jnp.zeros_like(accd_ref)
            acct_ref[...] = jnp.zeros_like(acct_ref)
            accl_ref[...] = jnp.zeros_like(accl_ref)

        # One fused MXU dot per tile: [P rows ; T rows] x [win*cos | win*(-sin)].
        lhs = jnp.concatenate([fr_ref[0], fr_ref[1]], axis=0)        # (2*TM, n_fft) bf16
        y = jnp.dot(lhs, basis_ref[...],
                    preferred_element_type=jnp.float32)              # (2*TM, 2*FP) f32

        # Target path first, then prediction path (fewer live (TM, FP) temporaries).
        ty = y[TM:, :]
        t_sq = ty[:, :FP] * ty[:, :FP] + ty[:, FP:] * ty[:, FP:]     # |T|^2  (TM, FP)
        acct_ref[0] += t_sq                                          # sum t^2
        t_mag = jnp.sqrt(t_sq)
        log_t = jnp.log(jnp.maximum(t_sq, 1e-18))                    # 1e-9 magnitude floor

        py = y[:TM, :]
        p_sq = py[:, :FP] * py[:, :FP] + py[:, FP:] * py[:, FP:]     # |P|^2  (TM, FP)
        diff = t_mag - jnp.sqrt(p_sq)
        accd_ref[0] += diff * diff                                   # sum (t-p)^2
        log_p = jnp.log(jnp.maximum(p_sq, 1e-18))
        accl_ref[0] += 0.5 * jnp.abs(log_p - log_t)                  # sum |log p - log t|

    acc_shape = jax.ShapeDtypeStruct((ncores, TM, FP), jnp.float32)
    acc_spec = pl.BlockSpec((1, TM, FP), lambda c, i: (c, 0, 0))
    frames_spec = pl.BlockSpec((2, TM, n_fft),
                               lambda c, i: (0, c * tiles_per_core + i, 0))
    # TODO(synk): single-buffer this constant operand (pipeline_mode=pl.Buffered(1)) and
    # add a frequency grid axis over its columns once n_fft >= ~1.5k so the basis fits
    # v7x's 64 MiB VMEM; at the sizes exercised here it is far below the limit.
    basis_spec = pl.BlockSpec((n_fft, 2 * FP), lambda c, i: (0, 0))

    accd, acct, accl = pl.pallas_call(
        kernel,
        out_shape=(acc_shape, acc_shape, acc_shape),
        grid_spec=pltpu.PrefetchScalarGridSpec(
            num_scalar_prefetch=0,
            grid=(ncores, tiles_per_core),
            in_specs=[frames_spec, basis_spec],
            out_specs=(acc_spec, acc_spec, acc_spec),
        ),
        # Outer axis is the per-TensorCore split (size > 1 only on v7x); if profiling
        # shows one v7x core idle, switch axis 0 to pltpu.CORE_PARALLEL.
        compiler_params=pltpu.CompilerParams(
            dimension_semantics=("parallel", "arbitrary"),
            vmem_limit_bytes=vmem_limit,
        ),
    )(frames, basis)

    # --- scalar glue: final reductions / norms / mean ---
    sum_sq_diff = jnp.sum(accd)
    sum_sq_t = jnp.sum(acct)
    sum_abs_log = jnp.sum(accl)
    sc_loss = jnp.sqrt(sum_sq_diff) / jnp.sqrt(sum_sq_t)
    lmag_loss = sum_abs_log / jnp.float32(M * F)
    return sc_loss, lmag_loss


def _reference(prediction, target, *, n_fft, hop_length, win_length):
    # pure-JAX f32 reference (same math, no Pallas) for a sanity check
    F = n_fft // 2 + 1
    win = _hann_window(win_length)
    left = (n_fft - win_length) // 2
    win_full = jnp.pad(win, (left, n_fft - win_length - left))
    k = jnp.arange(n_fft, dtype=jnp.float32)[:, None]
    f = jnp.arange(F, dtype=jnp.float32)[None, :]
    ang = 2.0 * jnp.pi * k * f / n_fft

    def mag(x):
        fr = _frame_signal(x.astype(jnp.float32), n_fft, hop_length) * win_full
        re = jnp.einsum("bnk,kf->bnf", fr, jnp.cos(ang))
        im = jnp.einsum("bnk,kf->bnf", fr, -jnp.sin(ang))
        return jnp.sqrt(re * re + im * im)

    p_mag, t_mag = mag(prediction), mag(target)
    sc = jnp.sqrt(jnp.sum((t_mag - p_mag) ** 2)) / jnp.sqrt(jnp.sum(t_mag ** 2))
    p_safe = jnp.where(p_mag == 0.0, 1e-9, p_mag)
    t_safe = jnp.where(t_mag == 0.0, 1e-9, t_mag)
    lmag = jnp.mean(jnp.abs(jnp.log(p_safe) - jnp.log(t_safe)))
    return sc, lmag


if __name__ == "__main__":
    # small, module-consistent shapes: batch of 1-D audio signals
    B, T = 2, 256
    n_fft, hop_length, win_length = 64, 16, 64

    key = jax.random.PRNGKey(0)
    kp, kt = jax.random.split(key)
    prediction = jax.random.normal(kp, (B, T), dtype=jnp.float32)
    target = jax.random.normal(kt, (B, T), dtype=jnp.float32)

    sc_loss, lmag_loss = single_stft_loss(
        prediction, target, n_fft=n_fft, hop_length=hop_length, win_length=win_length
    )
    sc_loss = jax.block_until_ready(sc_loss)
    lmag_loss = jax.block_until_ready(lmag_loss)

    sc_ref, lmag_ref = _reference(
        prediction, target, n_fft=n_fft, hop_length=hop_length, win_length=win_length
    )
    # tolerance slightly looser than the f32 version: the kernel uses bf16 MXU inputs
    # (per perf review) with f32 accumulation; observed error is ~1e-3-level or below.
    assert jnp.allclose(sc_loss, sc_ref, rtol=1e-2, atol=1e-3), (sc_loss, sc_ref)
    assert jnp.allclose(lmag_loss, lmag_ref, rtol=1e-2, atol=1e-3), (lmag_loss, lmag_ref)
    assert jnp.isfinite(sc_loss) and jnp.isfinite(lmag_loss)

    print("KERNEL_OK")
</pallas_src>

<mosaic_0001>
module attributes {stable_mosaic.version = 11 : i64} {
  func.func @kernel(%arg0: i32, %arg1: i32, %arg2: memref<2x48x64xbf16, #tpu.memory_space<vmem>>, %arg3: memref<64x256xbf16, #tpu.memory_space<vmem>>, %arg4: memref<1x48x128xf32, #tpu.memory_space<vmem>>, %arg5: memref<1x48x128xf32, #tpu.memory_space<vmem>>, %arg6: memref<1x48x128xf32, #tpu.memory_space<vmem>>) attributes {dimension_semantics = [#tpu.dimension_semantics<parallel>, #tpu.dimension_semantics<arbitrary>], iteration_bounds = array<i64: 1, 1>, scalar_prefetch = 0 : i64, scratch_operands = 0 : i64, tpu.core_type = #tpu.core_type<tc>, window_params = [{transform_indices = @transform_0, window_bounds = array<i64: 2, 48, 64>}, {pipeline_mode = #tpu.pipeline_mode<synchronous>, transform_indices = @transform_1, window_bounds = array<i64: 64, 256>}, {transform_indices = @transform_2, window_bounds = array<i64: 1, 48, 128>}, {transform_indices = @transform_3, window_bounds = array<i64: 1, 48, 128>}, {transform_indices = @transform_4, window_bounds = array<i64: 1, 48, 128>}]} {
    %c0_i32 = arith.constant 0 : i32
    %0 = arith.cmpi eq, %arg1, %c0_i32 : i32
    %1 = arith.extui %0 : i1 to i32
    %c0_i32_0 = arith.constant 0 : i32
    %2 = arith.cmpi ne, %1, %c0_i32_0 : i32
    scf.if %2 {
      %cst_28 = arith.constant 0.000000e+00 : f32
      %58 = vector.broadcast %cst_28 : f32 to vector<1x48x128xf32>
      %c0_29 = arith.constant 0 : index
      %c0_30 = arith.constant 0 : index
      %c0_31 = arith.constant 0 : index
      %59 = vector.load %arg4[%c0_29, %c0_30, %c0_31] : memref<1x48x128xf32, #tpu.memory_space<vmem>>, vector<1x48x128xf32>
      tpu.vector_store %arg4[%c0_29, %c0_30, %c0_31], %58 {strides = array<i32>} : memref<1x48x128xf32, #tpu.memory_space<vmem>>, vector<1x48x128xf32>,
      %cst_32 = arith.constant 0.000000e+00 : f32
      %60 = vector.broadcast %cst_32 : f32 to vector<1x48x128xf32>
      %c0_33 = arith.constant 0 : index
      %c0_34 = arith.constant 0 : index
      %c0_35 = arith.constant 0 : index
      %61 = vector.load %arg5[%c0_33, %c0_34, %c0_35] : memref<1x48x128xf32, #tpu.memory_space<vmem>>, vector<1x48x128xf32>
      tpu.vector_store %arg5[%c0_33, %c0_34, %c0_35], %60 {strides = array<i32>} : memref<1x48x128xf32, #tpu.memory_space<vmem>>, vector<1x48x128xf32>,
      %cst_36 = arith.constant 0.000000e+00 : f32
      %62 = vector.broadcast %cst_36 : f32 to vector<1x48x128xf32>
      %c0_37 = arith.constant 0 : index
      %c0_38 = arith.constant 0 : index
      %c0_39 = arith.constant 0 : index
      %63 = vector.load %arg6[%c0_37, %c0_38, %c0_39] : memref<1x48x128xf32, #tpu.memory_space<vmem>>, vector<1x48x128xf32>
      tpu.vector_store %arg6[%c0_37, %c0_38, %c0_39], %62 {strides = array<i32>} : memref<1x48x128xf32, #tpu.memory_space<vmem>>, vector<1x48x128xf32>,
    } else {
    }
    %c0 = arith.constant 0 : index
    %c0_1 = arith.constant 0 : index
    %c0_2 = arith.constant 0 : index
    %3 = vector.load %arg2[%c0, %c0_1, %c0_2] : memref<2x48x64xbf16, #tpu.memory_space<vmem>>, vector<1x48x64xbf16>
    %4 = vector.shape_cast %3 : vector<1x48x64xbf16> to vector<48x64xbf16>
    %c1 = arith.constant 1 : index
    %c0_3 = arith.constant 0 : index
    %c0_4 = arith.constant 0 : index
    %5 = vector.load %arg2[%c1, %c0_3, %c0_4] : memref<2x48x64xbf16, #tpu.memory_space<vmem>>, vector<1x48x64xbf16>
    %6 = vector.shape_cast %5 : vector<1x48x64xbf16> to vector<48x64xbf16>
    %7 = tpu.concatenate %4, %6 in 0 : vector<48x64xbf16>, vector<48x64xbf16> -> vector<96x64xbf16>
    %c0_5 = arith.constant 0 : index
    %c0_6 = arith.constant 0 : index
    %8 = vector.load %arg3[%c0_5, %c0_6] : memref<64x256xbf16, #tpu.memory_space<vmem>>, vector<64x256xbf16>
    %cst = arith.constant dense<0.000000e+00> : vector<96x256xf32>
    %9 = tpu.matmul %7, %8, %cst {dimension_numbers = #tpu.dot_dimension_numbers<[1], [0], [0], [1], [0, 0, 1, 1], [], []>} : vector<96x64xbf16>, vector<64x256xbf16>, vector<96x256xf32> -> vector<96x256xf32>
    %10 = vector.extract_strided_slice %9 {offsets = [48, 0], sizes = [48, 256], strides = [1, 1]} : vector<96x256xf32> to vector<48x256xf32>
    %11 = vector.extract_strided_slice %10 {offsets = [0, 0], sizes = [48, 128], strides = [1, 1]} : vector<48x256xf32> to vector<48x128xf32>
    %12 = vector.extract_strided_slice %10 {offsets = [0, 0], sizes = [48, 128], strides = [1, 1]} : vector<48x256xf32> to vector<48x128xf32>
    %13 = arith.mulf %11, %12 : vector<48x128xf32>
    %14 = vector.extract_strided_slice %10 {offsets = [0, 128], sizes = [48, 128], strides = [1, 1]} : vector<48x256xf32> to vector<48x128xf32>
    %15 = vector.extract_strided_slice %10 {offsets = [0, 128], sizes = [48, 128], strides = [1, 1]} : vector<48x256xf32> to vector<48x128xf32>
    %16 = arith.mulf %14, %15 : vector<48x128xf32>
    %17 = arith.addf %13, %16 : vector<48x128xf32>
    %c0_7 = arith.constant 0 : index
    %c0_8 = arith.constant 0 : index
    %c0_9 = arith.constant 0 : index
    %18 = vector.load %arg5[%c0_7, %c0_8, %c0_9] : memref<1x48x128xf32, #tpu.memory_space<vmem>>, vector<1x48x128xf32>
    %19 = vector.shape_cast %18 : vector<1x48x128xf32> to vector<48x128xf32>
    %20 = arith.addf %19, %17 : vector<48x128xf32>
    %c0_10 = arith.constant 0 : index
    %c0_11 = arith.constant 0 : index
    %c0_12 = arith.constant 0 : index
    %21 = vector.load %arg5[%c0_10, %c0_11, %c0_12] : memref<1x48x128xf32, #tpu.memory_space<vmem>>, vector<1x48x128xf32>
    %22 = vector.shape_cast %21 : vector<1x48x128xf32> to vector<48x128xf32>
    %23 = vector.shape_cast %20 : vector<48x128xf32> to vector<1x48x128xf32>
    tpu.vector_store %arg5[%c0_10, %c0_11, %c0_12], %23 {strides = array<i32>} : memref<1x48x128xf32, #tpu.memory_space<vmem>>, vector<1x48x128xf32>,
    %24 = math.sqrt %17 : vector<48x128xf32>
    %cst_13 = arith.constant 1.000000e-18 : f32
    %25 = vector.broadcast %cst_13 : f32 to vector<48x128xf32>
    %26 = arith.maximumf %17, %25 : vector<48x128xf32>
    %27 = math.log %26 : vector<48x128xf32>
    %28 = vector.extract_strided_slice %9 {offsets = [0, 0], sizes = [48, 256], strides = [1, 1]} : vector<96x256xf32> to vector<48x256xf32>
    %29 = vector.extract_strided_slice %28 {offsets = [0, 0], sizes = [48, 128], strides = [1, 1]} : vector<48x256xf32> to vector<48x128xf32>
    %30 = vector.extract_strided_slice %28 {offsets = [0, 0], sizes = [48, 128], strides = [1, 1]} : vector<48x256xf32> to vector<48x128xf32>
    %31 = arith.mulf %29, %30 : vector<48x128xf32>
    %32 = vector.extract_strided_slice %28 {offsets = [0, 128], sizes = [48, 128], strides = [1, 1]} : vector<48x256xf32> to vector<48x128xf32>
    %33 = vector.extract_strided_slice %28 {offsets = [0, 128], sizes = [48, 128], strides = [1, 1]} : vector<48x256xf32> to vector<48x128xf32>
    %34 = arith.mulf %32, %33 : vector<48x128xf32>
    %35 = arith.addf %31, %34 : vector<48x128xf32>
    %36 = math.sqrt %35 : vector<48x128xf32>
    %37 = arith.subf %24, %36 : vector<48x128xf32>
    %c0_14 = arith.constant 0 : index
    %c0_15 = arith.constant 0 : index
    %c0_16 = arith.constant 0 : index
    %38 = vector.load %arg4[%c0_14, %c0_15, %c0_16] : memref<1x48x128xf32, #tpu.memory_space<vmem>>, vector<1x48x128xf32>
    %39 = vector.shape_cast %38 : vector<1x48x128xf32> to vector<48x128xf32>
    %40 = arith.mulf %37, %37 : vector<48x128xf32>
    %41 = arith.addf %39, %40 : vector<48x128xf32>
    %c0_17 = arith.constant 0 : index
    %c0_18 = arith.constant 0 : index
    %c0_19 = arith.constant 0 : index
    %42 = vector.load %arg4[%c0_17, %c0_18, %c0_19] : memref<1x48x128xf32, #tpu.memory_space<vmem>>, vector<1x48x128xf32>
    %43 = vector.shape_cast %42 : vector<1x48x128xf32> to vector<48x128xf32>
    %44 = vector.shape_cast %41 : vector<48x128xf32> to vector<1x48x128xf32>
    tpu.vector_store %arg4[%c0_17, %c0_18, %c0_19], %44 {strides = array<i32>} : memref<1x48x128xf32, #tpu.memory_space<vmem>>, vector<1x48x128xf32>,
    %cst_20 = arith.constant 1.000000e-18 : f32
    %45 = vector.broadcast %cst_20 : f32 to vector<48x128xf32>
    %46 = arith.maximumf %35, %45 : vector<48x128xf32>
    %47 = math.log %46 : vector<48x128xf32>
    %c0_21 = arith.constant 0 : index
    %c0_22 = arith.constant 0 : index
    %c0_23 = arith.constant 0 : index
    %48 = vector.load %arg6[%c0_21, %c0_22, %c0_23] : memref<1x48x128xf32, #tpu.memory_space<vmem>>, vector<1x48x128xf32>
    %49 = vector.shape_cast %48 : vector<1x48x128xf32> to vector<48x128xf32>
    %50 = arith.subf %47, %27 : vector<48x128xf32>
    %51 = math.absf %50 : vector<48x128xf32>
    %cst_24 = arith.constant 5.000000e-01 : f32
    %52 = vector.broadcast %cst_24 : f32 to vector<48x128xf32>
    %53 = arith.mulf %52, %51 : vector<48x128xf32>
    %54 = arith.addf %49, %53 : vector<48x128xf32>
    %c0_25 = arith.constant 0 : index
    %c0_26 = arith.constant 0 : index
    %c0_27 = arith.constant 0 : index
    %55 = vector.load %arg6[%c0_25, %c0_26, %c0_27] : memref<1x48x128xf32, #tpu.memory_space<vmem>>, vector<1x48x128xf32>
    %56 = vector.shape_cast %55 : vector<1x48x128xf32> to vector<48x128xf32>
    %57 = vector.shape_cast %54 : vector<48x128xf32> to vector<1x48x128xf32>
    tpu.vector_store %arg6[%c0_25, %c0_26, %c0_27], %57 {strides = array<i32>} : memref<1x48x128xf32, #tpu.memory_space<vmem>>, vector<1x48x128xf32>,
    return
  }
  func.func @transform_0(%arg0: i32, %arg1: i32) -> (i32, i32, i32) {
    %c1_i32 = arith.constant 1 : i32
    %0 = arith.muli %arg0, %c1_i32 : i32
    %1 = arith.addi %0, %arg1 : i32
    %c0_i32 = arith.constant 0 : i32
    %c0_i32_0 = arith.constant 0 : i32
    %c0_i32_1 = arith.constant 0 : i32
    return %c0_i32, %1, %c0_i32_0 : i32, i32, i32
  }
  func.func @transform_1(%arg0: i32, %arg1: i32) -> (i32, i32) {
    %c0_i32 = arith.constant 0 : i32
    %c0_i32_0 = arith.constant 0 : i32
    %c0_i32_1 = arith.constant 0 : i32
    return %c0_i32, %c0_i32_0 : i32, i32
  }
  func.func @transform_2(%arg0: i32, %arg1: i32) -> (i32, i32, i32) {
    %c0_i32 = arith.constant 0 : i32
    %c0_i32_0 = arith.constant 0 : i32
    %c0_i32_1 = arith.constant 0 : i32
    return %arg0, %c0_i32, %c0_i32_0 : i32, i32, i32
  }
  func.func @transform_3(%arg0: i32, %arg1: i32) -> (i32, i32, i32) {
    %c0_i32 = arith.constant 0 : i32
    %c0_i32_0 = arith.constant 0 : i32
    %c0_i32_1 = arith.constant 0 : i32
    return %arg0, %c0_i32, %c0_i32_0 : i32, i32, i32
  }
  func.func @transform_4(%arg0: i32, %arg1: i32) -> (i32, i32, i32) {
    %c0_i32 = arith.constant 0 : i32
    %c0_i32_0 = arith.constant 0 : i32
    %c0_i32_1 = arith.constant 0 : i32
    return %arg0, %c0_i32, %c0_i32_0 : i32, i32, i32
  }
}

</mosaic_0001>

<bundles_post_ra>
// kernel: single_stft_loss.1
= control target key start
LH: loop header
LB: loop body
LE: loop exit
PB: predicated region body
PF: predicated region fallthrough
CT: control target
= control target key end

     0   :  { %vm150_vm0 = vcmask 523264   ;;  %s1017_s1 = inlined_call_operand.vmem [shape: bf16[64,256], index: 1, kind: input, shape index: {}]   ;;  %s1018_s0 = inlined_call_operand.vmem [shape: bf16[2,48,64], index: 0, kind: input, shape index: {}]   ;;  %s1019_s3 = inlined_call_operand.vmem [shape: f32[1,48,128], index: 3, kind: output, shape index: {1}]   ;;  %s1020_s4 = inlined_call_operand.vmem [shape: f32[1,48,128], index: 4, kind: output, shape index: {2}]   ;;  %s1021_s2 = inlined_call_operand.vmem [shape: f32[1,48,128], index: 2, kind: output, shape index: {0}]  }
   0x1   :  { %v621_v0 = vld [vmem:[%s1017_s1 + $0x30] sm:$0xf]  ;;  %v652_v1 = vld [vmem:[%s1017_s1 + $0x34] sm:$0xf0]  ;;  %v651_v2 = vld [vmem:[%s1017_s1 + $0x34] sm:$0xf] }
   0x2   :  { %v622_v3 = vor.u32 %v652_v1, %v621_v0  ;;  %v623_v4 = vld [vmem:[%s1017_s1 + $0x38] sm:$0xf0]  ;;  %v613_v5 = vld [vmem:[%s1017_s1 + $0x20] sm:$0xf]  ;;  %v650_v6 = vld [vmem:[%s1017_s1 + $0x24] sm:$0xf0] }
   0x3   :  { %v626_v7 = vor.u32 %v651_v2, %v623_v4  ;;  %v649_v8 = vld [vmem:[%s1017_s1 + $0x24] sm:$0xf]  ;;  %v615_v9 = vld [vmem:[%s1017_s1 + $0x28] sm:$0xf0]  ;;  %v614_v10 = vor.u32 %v650_v6, %v613_v5  ;;  %v605_v12 = vld [vmem:[%s1017_s1 + $0x10] sm:$0xf] }
   0x4   :  { %173 = vmatpush.bf16.msra.mxu0 %v622_v3  ;;  %653 = vmatpush.bf16.msra.mxu2 %v622_v3  ;;  %v618_v11 = vor.u32 %v649_v8, %v615_v9  ;;  %v648_v13 = vld [vmem:[%s1017_s1 + $0x14] sm:$0xf0]  ;;  %v647_v14 = vld [vmem:[%s1017_s1 + $0x14] sm:$0xf]  ;;  %v607_v15 = vld [vmem:[%s1017_s1 + $0x18] sm:$0xf0] }
   0x5   :  { %212 = vmatpush.bf16.msra.mxu1 %v626_v7  ;;  %657 = vmatpush.bf16.msra.mxu3 %v626_v7  ;;  %v606_v16 = vor.u32 %v648_v13, %v605_v12  ;;  %v610_v17 = vor.u32 %v647_v14, %v607_v15  ;;  %v597_v18 = vld [vmem:[%s1017_s1] sm:$0xf]  ;;  %v646_v19 = vld [vmem:[%s1017_s1 + $0x4] sm:$0xf0]  ;;  %v645_v20 = vld [vmem:[%s1017_s1 + $0x4] sm:$0xf] }
   0x6   :  { %v599_v21 = vld [vmem:[%s1017_s1 + $0x8] sm:$0xf0]  ;;  %v598_v22 = vor.u32 %v646_v19, %v597_v18  ;;  %v639_v24 = vld [vmem:[%s1018_s0] sm:$0xff]  ;;  %v642_v25 = vld [vmem:[%s1018_s0 + $0x18] sm:$0xff] }
   0x7   :  { %v602_v23 = vor.u32 %v645_v20, %v599_v21  ;;  %v640_v26 = vld [vmem:[%s1018_s0 + $0x8] sm:$0xff]  ;;  %v643_v27 = vld [vmem:[%s1018_s0 + $0x20] sm:$0xff]  ;;  %v641_v28 = vld [vmem:[%s1018_s0 + $0x10] sm:$0xff] }
   0x8   :  { %174 = vmatpush.bf16.msra.mxu0 %v614_v10  ;;  %654 = vmatpush.bf16.msra.mxu2 %v614_v10  ;;  %v644_v29 = vld [vmem:[%s1018_s0 + $0x28] sm:$0xff] }
   0x9   :  { %213 = vmatpush.bf16.msra.mxu1 %v618_v11  ;;  %658 = vmatpush.bf16.msra.mxu3 %v618_v11 }
   0xc   :  { %175 = vmatpush.bf16.msra.mxu0 %v606_v16  ;;  %655 = vmatpush.bf16.msra.mxu2 %v606_v16 }
   0xd   :  { %214 = vmatpush.bf16.msra.mxu1 %v610_v17  ;;  %659 = vmatpush.bf16.msra.mxu3 %v610_v17 }
  0x10   :  { %176 = vmatpush.bf16.msra.mxu0 %v598_v22  ;;  %656 = vmatpush.bf16.msra.mxu2 %v598_v22 }
  0x11   :  { %215 = vmatpush.bf16.msra.mxu1 %v602_v23  ;;  %660 = vmatpush.bf16.msra.mxu3 %v602_v23 }
  0x13   :  { %627 = vmatmul.msk.bf16.vlgmr.msra.gmra.mxu0 %vm150_vm0, %v639_v24  ;;  %630 = vmatmul.msk.bf16.vlgmr.msra.gmra.mxu2 %vm150_vm0, %v642_v25 }
  0x14   :  { %633 = vmatmul.msk.bf16.vlgmr.msra.gmra.mxu1 %vm150_vm0, %v639_v24  ;;  %636 = vmatmul.msk.bf16.vlgmr.msra.gmra.mxu3 %vm150_vm0, %v642_v25 }
  0x23   :  { %628 = vmatmul.msk.bf16.gmra.mxu0 %vm150_vm0, %v640_v26  ;;  %631 = vmatmul.msk.bf16.gmra.mxu2 %vm150_vm0, %v643_v27 }
  0x24   :  { %634 = vmatmul.msk.bf16.gmra.mxu1 %vm150_vm0, %v640_v26  ;;  %637 = vmatmul.msk.bf16.gmra.mxu3 %vm150_vm0, %v643_v27 }
  0x33   :  { %629 = vmatmul.msk.bf16.gmra.mxu0 %vm150_vm0, %v641_v28  ;;  %632 = vmatmul.msk.bf16.gmra.mxu2 %vm150_vm0, %v644_v29 }
  0x34   :  { %635 = vmatmul.msk.bf16.gmra.mxu1 %vm150_vm0, %v641_v28  ;;  %638 = vmatmul.msk.bf16.gmra.mxu3 %vm150_vm0, %v644_v29 }
  0x90   :  { %v178_v30 = vpop.f32.mrf.mxu0 }
  0x91   :  { %v373_v31 = vmul.f32 %v178_v30, %v178_v30  ;;  %v217_v32 = vpop.f32.mrf.mxu1 }
  0x92   :  { %v379_v33 = vmul.f32 %v217_v32, %v217_v32 }
  0x94   :  { %v813_v34 = vadd.f32 %v379_v33, %v373_v31 }
  0x96   :  { %662 = vrsqrt.f32 %v813_v34  ;;  %v193_v35 = vpop.f32.mrf.mxu2  ;;  %v493_v36 = vmax.f32 %v813_v34, 1e-18  ;;  %vm398_vm1 = vcmp.eq.f32.partialorder %v813_v34, inf  ;;  %vm400_vm2 = vcmp.eq.f32.partialorder %v813_v34, 0.0 }
  0x97   :  { %v247_v37 = vmul.f32 %v193_v35, %v193_v35  ;;  %v232_v38 = vpop.f32.mrf.mxu3  ;;  %v401_v15 = vand.u32 2147483648, %v813_v34 }
  0x98   :  { %v253_v39 = vmul.f32 %v232_v38, %v232_v38  ;;  %v180_v40 = vpop.f32.mrf.mxu0  ;;  %664 = vlog2.f32 %v493_v36 }
  0x99   :  { %v374_v41 = vmul.f32 %v180_v40, %v180_v40  ;;  %v219_v42 = vpop.f32.mrf.mxu1 }
  0x9a   :  { %v817_v43 = vadd.f32 %v253_v39, %v247_v37  ;;  %v380_v44 = vmul.f32 %v219_v42, %v219_v42 }
  0x9c   :  { %v663_v45 = vpop.eup %662  ;;  %666 = vrsqrt.f32 %v817_v43  ;;  %v355_v47 = vmax.f32 %v817_v43, 1e-18  ;;  %v822_v48 = vadd.f32 %v380_v44, %v374_v41  ;;  %277 = vst [vmem:[%s1019_s3] sm:$0xff] %v817_v43  ;;  %vm290_vm3 = vcmp.eq.f32.partialorder %v817_v43, inf }
  0x9d   :  { %v392_v46 = vmul.f32 %v663_v45, %v813_v34  ;;  %vm292_vm4 = vcmp.eq.f32.partialorder %v817_v43, 0.0  ;;  %v293_v20 = vand.u32 2147483648, %v817_v43 }
  0x9e   :  { %v195_v49 = vpop.f32.mrf.mxu2  ;;  %668 = vlog2.f32 %v355_v47  ;;  %v494_v52 = vmax.f32 %v822_v48, 1e-18  ;;  %v665_v54 = vpop.eup %664  ;;  %vm410_vm5 = vcmp.eq.f32.partialorder %v822_v48, inf  ;;  %vm412_vm6 = vcmp.eq.f32.partialorder %v822_v48, 0.0 }
  0x9f   :  { %v393_v50 = vmul.f32 %v663_v45, %v392_v46  ;;  %v234_v51 = vpop.f32.mrf.mxu3  ;;  %670 = vrsqrt.f32 %v822_v48  ;;  %v248_v56 = vmul.f32 %v195_v49, %v195_v49  ;;  %v500_v1 = vmul.f32 0.6931472, %v665_v54 }
  0xa0   :  { %v183_v53 = vpop.f32.mrf.mxu0  ;;  %v254_v57 = vmul.f32 %v234_v51, %v234_v51  ;;  %672 = vlog2.f32 %v494_v52 }
  0xa1   :  { %v394_v55 = vmul.f32 0.5, %v393_v50  ;;  %v375_v58 = vmul.f32 %v183_v53, %v183_v53  ;;  %v222_v59 = vpop.f32.mrf.mxu1 }
  0xa2   :  { %v667_v60 = vpop.eup %666  ;;  %v381_v61 = vmul.f32 %v222_v59, %v222_v59  ;;  %v831_v0 = vadd.f32 %v254_v57, %v248_v56 }
  0xa3   :  { %v395_v62 = vsub.f32 1.5, %v394_v55  ;;  %v284_v63 = vmul.f32 %v667_v60, %v817_v43 }
  0xa4   :  { %v833_v2 = vadd.f32 %v381_v61, %v375_v58  ;;  %v669_v3 = vpop.eup %668  ;;  %674 = vrsqrt.f32 %v831_v0  ;;  %278 = vst [vmem:[%s1019_s3 + $0x8] sm:$0xff] %v831_v0  ;;  %v356_v11 = vmax.f32 %v831_v0, 1e-18  ;;  %vm302_vm7 = vcmp.eq.f32.partialorder %v831_v0, inf }
  0xa5   :  { %v396_v4 = vmul.f32 %v663_v45, %v395_v62  ;;  %v285_v5 = vmul.f32 %v667_v60, %v284_v63  ;;  %v671_v6 = vpop.eup %670  ;;  %v362_v7 = vmul.f32 0.6931472, %v669_v3  ;;  %vm304_vm8 = vcmp.eq.f32.partialorder %v831_v0, 0.0 }
  0xa6   :  { %v404_v10 = vmul.f32 %v671_v6, %v822_v48  ;;  %676 = vrsqrt.f32 %v833_v2  ;;  %v198_v13 = vpop.f32.mrf.mxu2  ;;  %v673_v14 = vpop.eup %672  ;;  %v495_v39 = vmax.f32 %v833_v2, 1e-18  ;;  %vm422_vm9 = vcmp.eq.f32.partialorder %v833_v2, inf }
  0xa7   :  { %v397_v8 = vmul.f32 %v396_v4, %v813_v34  ;;  %v286_v9 = vmul.f32 0.5, %v285_v5  ;;  %v517_v12 = vsub.f32 %v500_v1, %v362_v7  ;;  %v237_v18 = vpop.f32.mrf.mxu3  ;;  %678 = vlog2.f32 %v356_v11 }
  0xa8   :  { %v405_v17 = vmul.f32 %v671_v6, %v404_v10  ;;  %v185_v19 = vpop.f32.mrf.mxu0  ;;  %v249_v27 = vmul.f32 %v198_v13, %v198_v13  ;;  %v502_v29 = vmul.f32 0.6931472, %v673_v14  ;;  %v255_v31 = vmul.f32 %v237_v18, %v237_v18 }
  0xa9   :  { %v287_v16 = vsub.f32 1.5, %v286_v9  ;;  %v523_v21 = vand.u32 2147483647, %v517_v12  ;;  %v224_v22 = vpop.f32.mrf.mxu1  ;;  %v399_v24 = vsel %vm398_vm1, %v813_v34, %v397_v8  ;;  %v376_v35 = vmul.f32 %v185_v19, %v185_v19 }
  0xaa   :  { %v675_v23 = vpop.eup %674  ;;  %v406_v26 = vmul.f32 0.5, %v405_v17  ;;  %v382_v36 = vmul.f32 %v224_v22, %v224_v22  ;;  %v856_v40 = vadd.f32 %v255_v31, %v249_v27  ;;  %v402_v41 = vsel %vm400_vm2, %v401_v15, %v399_v24 }
  0xab   :  { %v288_v25 = vmul.f32 %v667_v60, %v287_v16  ;;  %v529_v28 = vmul.f32 0.5, %v523_v21  ;;  %v296_v30 = vmul.f32 %v675_v23, %v831_v0  ;;  %v413_v60 = vand.u32 2147483648, %v822_v48 }
  0xac   :  { %v407_v33 = vsub.f32 1.5, %v406_v26  ;;  %v677_v37 = vpop.eup %676  ;;  %680 = vrsqrt.f32 %v856_v40  ;;  %v870_v52 = vadd.f32 %v382_v36, %v376_v35  ;;  %279 = vst [vmem:[%s1019_s3 + $0x10] sm:$0xff] %v856_v40  ;;  %v357_v62 = vmax.f32 %v856_v40, 1e-18 }
  0xad   :  { %v289_v32 = vmul.f32 %v288_v25, %v817_v43  ;;  %v297_v38 = vmul.f32 %v675_v23, %v296_v30  ;;  %v416_v45 = vmul.f32 %v677_v37, %v833_v2  ;;  %v679_v46 = vpop.eup %678  ;;  %541 = vst [vmem:[%s1020_s4] sm:$0xff] %v529_v28  ;;  %682 = vlog2.f32 %v495_v39 }
  0xae   :  { %v408_v44 = vmul.f32 %v671_v6, %v407_v33  ;;  %v364_v50 = vmul.f32 0.6931472, %v679_v46  ;;  %684 = vrsqrt.f32 %v870_v52  ;;  %v305_v7 = vand.u32 2147483648, %v831_v0 }
  0xaf   :  { %v291_v42 = vsel %vm290_vm3, %v817_v43, %v289_v32  ;;  %v298_v49 = vmul.f32 0.5, %v297_v38  ;;  %v417_v51 = vmul.f32 %v677_v37, %v416_v45  ;;  %v200_v43 = vpop.f32.mrf.mxu2  ;;  %v239_v58 = vpop.f32.mrf.mxu3  ;;  %686 = vlog2.f32 %v357_v62 }
  0xb0   :  { %v294_v47 = vsel %vm292_vm4, %v293_v20, %v291_v42  ;;  %v409_v53 = vmul.f32 %v408_v44, %v822_v48  ;;  %v518_v56 = vsub.f32 %v502_v29, %v364_v50  ;;  %v188_v59 = vpop.f32.mrf.mxu0  ;;  %v250_v13 = vmul.f32 %v200_v43, %v200_v43 }
  0xb1   :  { %v463_v34 = vsub.f32 %v294_v47, %v402_v41  ;;  %v299_v54 = vsub.f32 1.5, %v298_v49  ;;  %v418_v57 = vmul.f32 0.5, %v417_v51  ;;  %v227_v63 = vpop.f32.mrf.mxu1  ;;  %v256_v14 = vmul.f32 %v239_v58, %v239_v58 }
  0xb2   :  { %v524_v1 = vand.u32 2147483647, %v518_v56  ;;  %v681_v4 = vpop.eup %680  ;;  %v411_v5 = vsel %vm410_vm5, %v822_v48, %v409_v53  ;;  %vm424_vm10 = vcmp.eq.f32.partialorder %v833_v2, 0.0  ;;  %v496_v20 = vmax.f32 %v870_v52, 1e-18 }
  0xb3   :  { %v475_v55 = vmul.f32 %v463_v34, %v463_v34  ;;  %v300_v61 = vmul.f32 %v675_v23, %v299_v54  ;;  %v419_v3 = vsub.f32 1.5, %v418_v57  ;;  %v308_v10 = vmul.f32 %v681_v4, %v856_v40  ;;  %v683_v11 = vpop.eup %682 }
  0xb4   :  { %v530_v8 = vmul.f32 0.5, %v524_v1  ;;  %v414_v15 = vsel %vm412_vm6, %v413_v60, %v411_v5  ;;  %v902_v21 = vadd.f32 %v256_v14, %v250_v13  ;;  %v685_v22 = vpop.eup %684  ;;  %v377_v48 = vmul.f32 %v188_v59, %v188_v59 }
  0xb5   :  { %v301_v6 = vmul.f32 %v300_v61, %v831_v0  ;;  %487 = vst [vmem:[%s1021_s2] sm:$0xff] %v475_v55  ;;  %v420_v9 = vmul.f32 %v677_v37, %v419_v3  ;;  %v309_v17 = vmul.f32 %v681_v4, %v308_v10  ;;  %v383_v24 = vmul.f32 %v227_v63, %v227_v63  ;;  %v687_v25 = vpop.eup %686 }
  0xb6   :  { %542 = vst [vmem:[%s1020_s4 + $0x8] sm:$0xff] %v530_v8  ;;  %v425_v27 = vand.u32 2147483648, %v833_v2  ;;  %v428_v28 = vmul.f32 %v685_v22, %v870_v52  ;;  %vm314_vm11 = vcmp.eq.f32.partialorder %v856_v40, inf  ;;  %v366_v31 = vmul.f32 0.6931472, %v687_v25 }
  0xb7   :  { %v303_v12 = vsel %vm302_vm7, %v831_v0, %v301_v6  ;;  %v421_v19 = vmul.f32 %v420_v9, %v833_v2  ;;  %v504_v0 = vmul.f32 0.6931472, %v683_v11  ;;  %v310_v23 = vmul.f32 0.5, %v309_v17  ;;  %v203_v29 = vpop.f32.mrf.mxu2  ;;  %v242_v32 = vpop.f32.mrf.mxu3  ;;  %280 = vst [vmem:[%s1019_s3 + $0x18] sm:$0xff] %v902_v21 }
  0xb8   :  { %v306_v16 = vsel %vm304_vm8, %v305_v7, %v303_v12  ;;  %688 = vrsqrt.f32 %v902_v21  ;;  %v190_v33 = vpop.f32.mrf.mxu0  ;;  %v429_v36 = vmul.f32 %v685_v22, %v428_v28  ;;  %v358_v41 = vmax.f32 %v902_v21, 1e-18 }
  0xb9   :  { %v464_v18 = vsub.f32 %v306_v16, %v414_v15  ;;  %v311_v30 = vsub.f32 1.5, %v310_v23  ;;  %v423_v35 = vsel %vm422_vm9, %v833_v2, %v421_v19  ;;  %690 = vlog2.f32 %v496_v20  ;;  %v229_v37 = vpop.f32.mrf.mxu1 }
  0xba   :  { %v519_v39 = vsub.f32 %v504_v0, %v366_v31  ;;  %v919_v42 = vadd.f32 %v383_v24, %v377_v48  ;;  %v430_v44 = vmul.f32 0.5, %v429_v36  ;;  %v251_v45 = vmul.f32 %v203_v29, %v203_v29 }
  0xbb   :  { %v476_v26 = vmul.f32 %v464_v18, %v464_v18  ;;  %v312_v38 = vmul.f32 %v681_v4, %v311_v30  ;;  %v257_v46 = vmul.f32 %v242_v32, %v242_v32  ;;  %v378_v47 = vmul.f32 %v190_v33, %v190_v33 }
  0xbc   :  { %v525_v34 = vand.u32 2147483647, %v519_v39  ;;  %692 = vlog2.f32 %v358_v41  ;;  %v384_v50 = vmul.f32 %v229_v37, %v229_v37  ;;  %vm316_vm12 = vcmp.eq.f32.partialorder %v856_v40, 0.0 }
  0xbd   :  { %488 = vst [vmem:[%s1021_s2 + $0x8] sm:$0xff] %v476_v26  ;;  %v313_v49 = vmul.f32 %v312_v38, %v856_v40  ;;  %v317_v51 = vand.u32 2147483648, %v856_v40  ;;  %v431_v53 = vsub.f32 1.5, %v430_v44  ;;  %694 = vrsqrt.f32 %v919_v42 }
  0xbe   :  { %v689_v54 = vpop.eup %688  ;;  %v426_v43 = vsel %vm424_vm10, %v425_v27, %v423_v35  ;;  %v531_v56 = vmul.f32 0.5, %v525_v34  ;;  %v497_v57 = vmax.f32 %v919_v42, 1e-18  ;;  %v935_v62 = vadd.f32 %v257_v46, %v251_v45 }
  0xbf   :  { %v315_v55 = vsel %vm314_vm11, %v856_v40, %v313_v49  ;;  %v691_v58 = vpop.eup %690  ;;  %v432_v60 = vmul.f32 %v685_v22, %v431_v53  ;;  %v320_v61 = vmul.f32 %v689_v54, %v902_v21  ;;  %v937_v1 = vadd.f32 %v384_v50, %v378_v47  ;;  %v205_v11 = vpop.f32.mrf.mxu2 }
  0xc0   :  { %v318_v59 = vsel %vm316_vm12, %v317_v51, %v315_v55  ;;  %696 = vlog2.f32 %v497_v57  ;;  %543 = vst [vmem:[%s1020_s4 + $0x10] sm:$0xff] %v531_v56  ;;  %v506_v5 = vmul.f32 0.6931472, %v691_v58  ;;  %v359_v9 = vmax.f32 %v935_v62, 1e-18  ;;  %v244_v14 = vpop.f32.mrf.mxu3 }
  0xc1   :  { %v465_v63 = vsub.f32 %v318_v59, %v426_v43  ;;  %v321_v2 = vmul.f32 %v689_v54, %v320_v61  ;;  %698 = vrsqrt.f32 %v935_v62  ;;  %v433_v40 = vmul.f32 %v432_v60, %v870_v52  ;;  %281 = vst [vmem:[%s1019_s3 + $0x20] sm:$0xff] %v935_v62 }
  0xc2   :  { %v693_v3 = vpop.eup %692  ;;  %700 = vrsqrt.f32 %v937_v1  ;;  %vm434_vm13 = vcmp.eq.f32.partialorder %v870_v52, inf  ;;  %vm436_vm14 = vcmp.eq.f32.partialorder %v870_v52, 0.0  ;;  %v437_v17 = vand.u32 2147483648, %v870_v52 }
  0xc3   :  { %v477_v4 = vmul.f32 %v465_v63, %v465_v63  ;;  %v695_v6 = vpop.eup %694  ;;  %v322_v7 = vmul.f32 0.5, %v321_v2  ;;  %v368_v8 = vmul.f32 0.6931472, %v693_v3  ;;  %702 = vlog2.f32 %v359_v9 }
  0xc4   :  { %v440_v10 = vmul.f32 %v695_v6, %v919_v42  ;;  %v435_v16 = vsel %vm434_vm13, %v870_v52, %v433_v40  ;;  %vm326_vm15 = vcmp.eq.f32.partialorder %v902_v21, inf  ;;  %v252_v0 = vmul.f32 %v205_v11, %v205_v11 }
  0xc5   :  { %v323_v12 = vsub.f32 1.5, %v322_v7  ;;  %v520_v13 = vsub.f32 %v506_v5, %v368_v8  ;;  %489 = vst [vmem:[%s1021_s2 + $0x10] sm:$0xff] %v477_v4  ;;  %vm328_vm0 = vcmp.eq.f32.partialorder %v902_v21, 0.0  ;;  %v258_v24 = vmul.f32 %v244_v14, %v244_v14 }
  0xc6   :  { %v697_v15 = vpop.eup %696  ;;  %v441_v18 = vmul.f32 %v695_v6, %v440_v10  ;;  %v438_v25 = vsel %vm436_vm14, %v437_v17, %v435_v16  ;;  %v329_v27 = vand.u32 2147483648, %v902_v21  ;;  %v498_v37 = vmax.f32 %v937_v1, 1e-18 }
  0xc7   :  { %v699_v19 = vpop.eup %698  ;;  %v324_v20 = vmul.f32 %v689_v54, %v323_v12  ;;  %v526_v22 = vand.u32 2147483647, %v520_v13  ;;  %v508_v30 = vmul.f32 0.6931472, %v697_v15  ;;  %v963_v32 = vadd.f32 %v258_v24, %v252_v0 }
  0xc8   :  { %v442_v23 = vmul.f32 0.5, %v441_v18  ;;  %v332_v48 = vmul.f32 %v699_v19, %v935_v62  ;;  %v701_v52 = vpop.eup %700  ;;  %vm446_vm1 = vcmp.eq.f32.partialorder %v919_v42, inf  ;;  %vm448_vm2 = vcmp.eq.f32.partialorder %v919_v42, 0.0 }
  0xc9   :  { %v325_v26 = vmul.f32 %v324_v20, %v902_v21  ;;  %v532_v28 = vmul.f32 0.5, %v526_v22  ;;  %v703_v33 = vpop.eup %702  ;;  %v452_v36 = vmul.f32 %v701_v52, %v937_v1  ;;  %704 = vrsqrt.f32 %v963_v32  ;;  %282 = vst [vmem:[%s1019_s3 + $0x28] sm:$0xff] %v963_v32 }
  0xca   :  { %v443_v29 = vsub.f32 1.5, %v442_v23  ;;  %v333_v31 = vmul.f32 %v699_v19, %v332_v48  ;;  %v370_v44 = vmul.f32 0.6931472, %v703_v33  ;;  %706 = vlog2.f32 %v498_v37 }
  0xcb   :  { %v327_v35 = vsel %vm326_vm15, %v902_v21, %v325_v26  ;;  %544 = vst [vmem:[%s1020_s4 + $0x18] sm:$0xff] %v532_v28  ;;  %v453_v46 = vmul.f32 %v701_v52, %v452_v36  ;;  %v360_v54 = vmax.f32 %v963_v32, 1e-18  ;;  %v449_v59 = vand.u32 2147483648, %v919_v42 }
  0xcc   :  { %v330_v38 = vsel %vm328_vm0, %v329_v27, %v327_v35  ;;  %v444_v39 = vmul.f32 %v695_v6, %v443_v29  ;;  %v334_v41 = vmul.f32 0.5, %v333_v31  ;;  %v521_v34 = vsub.f32 %v508_v30, %v370_v44 }
  0xcd   :  { %v466_v45 = vsub.f32 %v330_v38, %v438_v25  ;;  %v454_v51 = vmul.f32 0.5, %v453_v46  ;;  %vm338_vm3 = vcmp.eq.f32.partialorder %v935_v62, inf  ;;  %v341_v60 = vand.u32 2147483648, %v935_v62 }
  0xce   :  { %v445_v47 = vmul.f32 %v444_v39, %v919_v42  ;;  %v335_v49 = vsub.f32 1.5, %v334_v41  ;;  %v527_v53 = vand.u32 2147483647, %v521_v34  ;;  %708 = vlog2.f32 %v360_v54 }
  0xcf   :  { %v478_v50 = vmul.f32 %v466_v45, %v466_v45  ;;  %v455_v57 = vsub.f32 1.5, %v454_v51  ;;  %v705_v58 = vpop.eup %704  ;;  %vm340_vm4 = vcmp.eq.f32.partialorder %v935_v62, 0.0  ;;  %vm458_vm5 = vcmp.eq.f32.partialorder %v937_v1, inf }
  0xd0   :  { %v336_v21 = vmul.f32 %v699_v19, %v335_v49  ;;  %v447_v43 = vsel %vm446_vm1, %v919_v42, %v445_v47  ;;  %v533_v56 = vmul.f32 0.5, %v527_v53  ;;  %v344_v63 = vmul.f32 %v705_v58, %v963_v32  ;;  %v707_v4 = vpop.eup %706 }
  0xd1   :  { %490 = vst [vmem:[%s1021_s2 + $0x18] sm:$0xff] %v478_v50  ;;  %v450_v2 = vsel %vm448_vm2, %v449_v59, %v447_v43  ;;  %v456_v42 = vmul.f32 %v701_v52, %v455_v57  ;;  %v510_v9 = vmul.f32 0.6931472, %v707_v4  ;;  %v461_v17 = vand.u32 2147483648, %v937_v1 }
  0xd2   :  { %v337_v55 = vmul.f32 %v336_v21, %v935_v62  ;;  %545 = vst [vmem:[%s1020_s4 + $0x20] sm:$0xff] %v533_v56  ;;  %v345_v5 = vmul.f32 %v705_v58, %v344_v63  ;;  %vm350_vm6 = vcmp.eq.f32.partialorder %v963_v32, inf  ;;  %v353_v18 = vand.u32 2147483648, %v963_v32 }
  0xd3   :  { %v457_v10 = vmul.f32 %v456_v42, %v937_v1  ;;  %vm460_vm7 = vcmp.eq.f32.partialorder %v937_v1, 0.0  ;;  %vm352_vm8 = vcmp.eq.f32.partialorder %v963_v32, 0.0 }
  0xd4   :  { %v339_v61 = vsel %vm338_vm3, %v935_v62, %v337_v55  ;;  %v346_v7 = vmul.f32 0.5, %v345_v5  ;;  %v709_v8 = vpop.eup %708 }
  0xd5   :  { %v342_v3 = vsel %vm340_vm4, %v341_v60, %v339_v61  ;;  %v372_v62 = vmul.f32 0.6931472, %v709_v8  ;;  %v459_v14 = vsel %vm458_vm5, %v937_v1, %v457_v10 }
  0xd6   :  { %v467_v40 = vsub.f32 %v342_v3, %v450_v2  ;;  %v347_v11 = vsub.f32 1.5, %v346_v7  ;;  %v462_v22 = vsel %vm460_vm7, %v461_v17, %v459_v14 }
  0xd7   :  { %v522_v13 = vsub.f32 %v510_v9, %v372_v62 }
  0xd8   :  { %v479_v6 = vmul.f32 %v467_v40, %v467_v40  ;;  %v348_v12 = vmul.f32 %v705_v58, %v347_v11 }
  0xd9   :  { %v528_v16 = vand.u32 2147483647, %v522_v13 }
  0xda   :  { %491 = vst [vmem:[%s1021_s2 + $0x20] sm:$0xff] %v479_v6  ;;  %v349_v15 = vmul.f32 %v348_v12, %v963_v32 }
  0xdb   :  { %v534_v20 = vmul.f32 0.5, %v528_v16 }
  0xdc   :  { %v351_v19 = vsel %vm350_vm6, %v963_v32, %v349_v15 }
  0xdd   :  { %v354_v0 = vsel %vm352_vm8, %v353_v18, %v351_v19  ;;  %546 = vst [vmem:[%s1020_s4 + $0x28] sm:$0xff] %v534_v20 }
  0xde   :  { %v468_v23 = vsub.f32 %v354_v0, %v462_v22 }
  0xe0   :  { %v480_v48 = vmul.f32 %v468_v23, %v468_v23 }
  0xe2   :  { %492 = vst [vmem:[%s1021_s2 + $0x28] sm:$0xff] %v480_v48 }

</bundles_post_ra>
